<compile_context>
chip_gen: v5e
topology: v5e:2x2
jax: 0.10.0
libtpu: 0.0.40
codegen_flags: <defaults>
</compile_context>

<pallas_src>
import jax
import jax.numpy as jnp
from jax.experimental import pallas as pl
from jax.experimental.pallas import tpu as pltpu


def _patch_embed_kernel(patches_ref, w_ref, pos_ref, out_ref):
    # patches_ref: (TR, K) bf16 ; w_ref: (K, E) bf16 ; pos_ref/out_ref: (TR, E) f32
    y = jnp.dot(patches_ref[...], w_ref[...], preferred_element_type=jnp.float32)
    out_ref[...] = (y + pos_ref[...]).astype(out_ref.dtype)


def _round_up(v, m):
    return (v + m - 1) // m * m


def quant_patch_embedding_forward(x, weight, bias, cls_token, dist_token,
                                  pos_embed, patch_size, wscale=1.0):
    """x: (b, c, H, W). Returns (b, num_patches + 2, emb_size) float32."""
    b, c, H, W = x.shape
    s = patch_size
    h, w = H // s, W // s
    num_patches = h * w
    K = s * s * c
    E = weight.shape[0]
    NPP = num_patches + 2          # cls + dist + patches

    # --- dequant fold (trace-time skip when wscale == 1) ---
    ws = float(wscale)
    if ws != 1.0:
        weight = weight * (1.0 / ws)
        bias = bias * (1.0 / ws)

    # --- einops 'b c (h s1) (w s2) -> b (h w) (s1 s2 c)' (bf16 before transpose) ---
    # TODO(synk): for large images, fuse this layout change into the pallas input
    # (allow_input_fusion / in-kernel gather) instead of materializing it in HBM.
    xb = x.astype(jnp.bfloat16)
    patches = xb.reshape(b, c, h, s, w, s)
    patches = jnp.transpose(patches, (0, 2, 4, 3, 5, 1)).reshape(b, num_patches, K)
    # Two leading zero rows align kernel-output rows with final-output rows.
    patches_ext = jnp.pad(patches, ((0, 0), (2, 0), (0, 0)))        # (b, NPP, K) bf16

    w_t = weight.T.astype(jnp.bfloat16)                             # (K, E) bf16

    # pos_full rows 0/1 = token rows + their pos embeds; rows 2.. = pos + bias.
    tok = jnp.concatenate([cls_token[0], dist_token[0]], axis=0)    # (2, E)
    pos_full = jnp.concatenate(
        [pos_embed[0, :2] + tok, pos_embed[0, 2:] + bias[None, :]],
        axis=0).astype(jnp.float32)                                 # (NPP, E)

    # --- tiling: rows in multiples of 8, capped at 256 (VMEM headroom on v7x) ---
    row_tile = min(256, _round_up(NPP, 8))
    grid = (b, pl.cdiv(NPP, row_tile))

    cost = pl.CostEstimate(
        flops=2 * b * NPP * K * E,
        transcendentals=0,
        bytes_accessed=(b * NPP * K * 2 + K * E * 2 + NPP * E * 4
                        + b * NPP * E * 4),
    )

    # NOTE: E / K should be multiples of 128 for unmasked lane-dense stores and
    # full MXU tiles; real ViT dims (768 / 1024 / 1280) already are. The toy
    # shapes below use full-dim blocks, which is also legal.
    return pl.pallas_call(
        _patch_embed_kernel,
        out_shape=jax.ShapeDtypeStruct((b, NPP, E), jnp.float32),
        grid_spec=pltpu.PrefetchScalarGridSpec(
            num_scalar_prefetch=0,
            grid=grid,
            in_specs=[
                # leading batch dim squeezed -> kernel sees a 2-D (TR, K) ref
                pl.BlockSpec((None, row_tile, K), lambda i, j: (i, j, 0)),
                # weight: grid-invariant constant index_map (stays resident).
                # TODO(synk): pipeline_mode=pl.Buffered(1) would drop its second
                # VMEM buffer; left at default for compatibility.
                pl.BlockSpec((K, E), lambda i, j: (0, 0)),
                pl.BlockSpec((row_tile, E), lambda i, j: (j, 0)),
            ],
            out_specs=pl.BlockSpec((None, row_tile, E), lambda i, j: (i, j, 0)),
        ),
        compiler_params=pltpu.CompilerParams(
            dimension_semantics=("parallel", "parallel")),
        cost_estimate=cost,
    )(patches_ext, w_t, pos_full)


def _reference_forward(x, weight, bias, cls_token, dist_token, pos_embed,
                       patch_size, wscale=1.0, match_bf16=False):
    """Pure-JAX reference mirroring the PyTorch module forward."""
    b, c, H, W = x.shape
    s = patch_size
    h, w = H // s, W // s
    E = weight.shape[0]
    patches = x.reshape(b, c, h, s, w, s)
    patches = jnp.transpose(patches, (0, 2, 4, 3, 5, 1)).reshape(b, h * w, s * s * c)
    if match_bf16:
        proj = jnp.dot(patches.astype(jnp.bfloat16),
                       (weight.T / wscale).astype(jnp.bfloat16),
                       preferred_element_type=jnp.float32) + bias / wscale
    else:
        proj = (patches @ weight.T + bias) / wscale
    cls = jnp.broadcast_to(cls_token, (b, 1, E))
    dst = jnp.broadcast_to(dist_token, (b, 1, E))
    out = jnp.concatenate([cls, dst, proj], axis=1)
    return out + pos_embed


if __name__ == "__main__":
    # Small shapes consistent with the module: img_size multiple of patch_size.
    batch = 2
    in_channels = 4
    img_size = 16
    patch_size = 4
    emb_size = 32
    num_patches = (img_size // patch_size) ** 2          # 16
    patch_dim = patch_size * patch_size * in_channels    # 64

    key = jax.random.PRNGKey(0)
    kx, kw, kb, kc, kd, kp = jax.random.split(key, 6)

    x = jax.random.normal(kx, (batch, in_channels, img_size, img_size), jnp.float32)

    bound = 1.0 / (patch_dim ** 0.5)
    weight = jax.random.uniform(kw, (emb_size, patch_dim), jnp.float32, -bound, bound)
    bias = jax.random.uniform(kb, (emb_size,), jnp.float32, -bound, bound)
    cls_token = jax.random.normal(kc, (1, 1, emb_size), jnp.float32)
    dist_token = jax.random.normal(kd, (1, 1, emb_size), jnp.float32)
    pos_embed = jax.random.normal(kp, (1, num_patches + 2, emb_size), jnp.float32)

    out = quant_patch_embedding_forward(
        x, weight, bias, cls_token, dist_token, pos_embed, patch_size, wscale=1.0)
    out = jax.block_until_ready(out)
    assert out.shape == (batch, num_patches + 2, emb_size), out.shape

    # Tight check vs. a reference that uses the same bf16 matmul operands.
    ref_bf16 = _reference_forward(x, weight, bias, cls_token, dist_token,
                                  pos_embed, patch_size, match_bf16=True)
    assert jnp.allclose(out, ref_bf16, atol=2e-3, rtol=2e-3), \
        "mismatch vs bf16-matched reference"

    # Loose sanity check vs. the full-f32 PyTorch-equivalent reference.
    ref_f32 = _reference_forward(x, weight, bias, cls_token, dist_token,
                                 pos_embed, patch_size)
    assert jnp.allclose(out, ref_f32, atol=3e-2, rtol=3e-2), \
        "mismatch vs f32 reference"

    print("KERNEL_OK")
</pallas_src>

<mosaic_0001>
module attributes {stable_mosaic.version = 11 : i64} {
  func.func @_patch_embed_kernel(%arg0: i32, %arg1: i32, %arg2: memref<1x24x64xbf16, #tpu.memory_space<vmem>>, %arg3: memref<64x32xbf16, #tpu.memory_space<vmem>>, %arg4: memref<24x32xf32, #tpu.memory_space<vmem>>, %arg5: memref<1x24x32xf32, #tpu.memory_space<vmem>>) attributes {dimension_semantics = [#tpu.dimension_semantics<parallel>, #tpu.dimension_semantics<parallel>], iteration_bounds = array<i64: 2, 1>, scalar_prefetch = 0 : i64, scratch_operands = 0 : i64, tpu.core_type = #tpu.core_type<tc>, window_params = [{transform_indices = @transform_0, window_bounds = array<i64: 1, 24, 64>}, {pipeline_mode = #tpu.pipeline_mode<synchronous>, transform_indices = @transform_1, window_bounds = array<i64: 64, 32>}, {transform_indices = @transform_2, window_bounds = array<i64: 24, 32>}, {transform_indices = @transform_3, window_bounds = array<i64: 1, 24, 32>}]} {
    %c0 = arith.constant 0 : index
    %c0_0 = arith.constant 0 : index
    %c0_1 = arith.constant 0 : index
    %0 = vector.load %arg2[%c0, %c0_0, %c0_1] : memref<1x24x64xbf16, #tpu.memory_space<vmem>>, vector<1x24x64xbf16>
    %1 = vector.shape_cast %0 : vector<1x24x64xbf16> to vector<24x64xbf16>
    %c0_2 = arith.constant 0 : index
    %c0_3 = arith.constant 0 : index
    %2 = vector.load %arg3[%c0_2, %c0_3] : memref<64x32xbf16, #tpu.memory_space<vmem>>, vector<64x32xbf16>
    %cst = arith.constant dense<0.000000e+00> : vector<24x32xf32>
    %3 = tpu.matmul %1, %2, %cst {dimension_numbers = #tpu.dot_dimension_numbers<[1], [0], [0], [1], [0, 0, 1, 1], [], []>} : vector<24x64xbf16>, vector<64x32xbf16>, vector<24x32xf32> -> vector<24x32xf32>
    %c0_4 = arith.constant 0 : index
    %c0_5 = arith.constant 0 : index
    %4 = vector.load %arg4[%c0_4, %c0_5] : memref<24x32xf32, #tpu.memory_space<vmem>>, vector<24x32xf32>
    %5 = arith.addf %3, %4 : vector<24x32xf32>
    %c0_6 = arith.constant 0 : index
    %c0_7 = arith.constant 0 : index
    %c0_8 = arith.constant 0 : index
    %6 = vector.load %arg5[%c0_6, %c0_7, %c0_8] : memref<1x24x32xf32, #tpu.memory_space<vmem>>, vector<1x24x32xf32>
    %7 = vector.shape_cast %6 : vector<1x24x32xf32> to vector<24x32xf32>
    %8 = vector.shape_cast %5 : vector<24x32xf32> to vector<1x24x32xf32>
    tpu.vector_store %arg5[%c0_6, %c0_7, %c0_8], %8 {strides = array<i32>} : memref<1x24x32xf32, #tpu.memory_space<vmem>>, vector<1x24x32xf32>,
    return
  }
  func.func @transform_0(%arg0: i32, %arg1: i32) -> (i32, i32, i32) {
    %c0_i32 = arith.constant 0 : i32
    %c0_i32_0 = arith.constant 0 : i32
    return %arg0, %arg1, %c0_i32 : i32, i32, i32
  }
  func.func @transform_1(%arg0: i32, %arg1: i32) -> (i32, i32) {
    %c0_i32 = arith.constant 0 : i32
    %c0_i32_0 = arith.constant 0 : i32
    %c0_i32_1 = arith.constant 0 : i32
    return %c0_i32, %c0_i32_0 : i32, i32
  }
  func.func @transform_2(%arg0: i32, %arg1: i32) -> (i32, i32) {
    %c0_i32 = arith.constant 0 : i32
    %c0_i32_0 = arith.constant 0 : i32
    return %arg1, %c0_i32 : i32, i32
  }
  func.func @transform_3(%arg0: i32, %arg1: i32) -> (i32, i32, i32) {
    %c0_i32 = arith.constant 0 : i32
    %c0_i32_0 = arith.constant 0 : i32
    return %arg0, %arg1, %c0_i32 : i32, i32, i32
  }
}

</mosaic_0001>

<bundles_post_ra>
// kernel: tpu_custom_call.1
= control target key start
LH: loop header
LB: loop body
LE: loop exit
PB: predicated region body
PF: predicated region fallthrough
CT: control target
= control target key end

     0   :  { %s521_s12 = smov 0   ;;  %s523_s13 = smov 0   ;;  %s575_s0 = inlined_call_operand.vmem [shape: bf16[2,18,64], index: 0, kind: input, shape index: {}]   ;;  %s576_s1 = inlined_call_operand.vmem [shape: bf16[64,32], index: 1, kind: input, shape index: {}]   ;;  %s577_s2 = inlined_call_operand.vmem [shape: f32[18,32], index: 2, kind: input, shape index: {}]   ;;  %s578_s3 = inlined_call_operand.vmem [shape: f32[2,18,32], index: 3, kind: output, shape index: {}]  }
   0x1   :  { %s525_s14 = smov 0  }
   0x2 LB: > { %s25_s15 = sadd.s32 1, %s495_s13  ;;  %p415_p0 = scmp.ge.s32.totalorder %s499_s14, 1  ;;  %s499_s14 = sphi %s525_s14, %s13_s14   ;;  %s495_s13 = sphi %s523_s13, %s580_s13   ;;  %s491_s12 = sphi %s521_s12, %s579_s12  }
   0x3   : > { %p27_p1 = scmp.ge.s32.totalorder %s25_s15, 2  ;;  %p169_p2 = scmp.lt.s32.totalorder %s499_s14, 3 }
   0x5   : > { %s582_s15 = smov (%p27_p1, %s25_s15), 0  ;;  %p170_p3 = pnand %p415_p0, %p169_p2 }
   0x6   : > { %p207_p4 = scmp.lt.s32.totalorder (!%p170_p3), %s491_s12, 1 }
   0x7   : > { %173 = sbr.rel (%p170_p3) target bundleno = 165 (0xa5), region = 32 }
   0xc   : > { %v446_v0 = vld [vmem:[%s576_s1 + $0x18] sm:$0xff]  ;;  %v445_v1 = vld [vmem:[%s576_s1 + $0x10] sm:$0xff]  ;;  %s584_s12 = smov (!%p207_p4, %s491_s12), 1  ;;  %v444_v2 = vld [vmem:[%s576_s1 + $0x8] sm:$0xff]  ;;  %vm279_vm0 = vcmask 523264   ;;  %vm304_vm1 = vcmask 261120  }
   0xd   : > { %290 = vmatpush.bf16.msra.mxu0 %v446_v0  ;;  %447 = vmatpush.bf16.msra.mxu1 %v446_v0  ;;  %s451_s20 = smul.u32 12, %s584_s12  ;;  %v443_v5 = vld [vmem:[%s576_s1] sm:$0xff]  ;;  %v246_v9 = vld [vmem:[%s577_s2 + $0x10] sm:$0xff]  ;;  %v245_v14 = vld [vmem:[%s577_s2 + $0x8] sm:$0xff] }
   0xe   : > { %s452_s28 = smul.u32 24, %s584_s12  ;;  %v244_v8 = vld [vmem:[%s577_s2] sm:$0xff] }
   0xf   : > { %s214_s25 = scalar_lea.vmem %s575_s0, %s451_s20 }
  0x10   : > { %v235_v3 = vld [vmem:[%s214_s25 + $0x8] sm:$0xf]  ;;  %v442_v6 = vld [vmem:[%s214_s25] sm:$0xff]  ;;  %s230_s8 = scalar_lea.vmem %s578_s3, %s452_s28 }
  0x11   : > { %291 = vmatpush.bf16.msra.mxu0 %v445_v1  ;;  %448 = vmatpush.bf16.msra.mxu1 %v445_v1  ;;  %v252_v4 = vunpack.c.l.b16 %v235_v3 }
  0x13   : > { %v254_v7 = vpack.c.b16 %v252_v4, %v252_v4 }
  0x15   : > { %292 = vmatpush.bf16.msra.mxu0 %v444_v2  ;;  %449 = vmatpush.bf16.msra.mxu1 %v444_v2 }
  0x19   : > { %293 = vmatpush.bf16.msra.mxu0 %v443_v5  ;;  %450 = vmatpush.bf16.msra.mxu1 %v443_v5 }
  0x1c   : > { %438 = vmatmul.msk.bf16.vlgmr.msra.gmra.mxu0 %vm279_vm0, %v442_v6  ;;  %439 = vmatmul.msk.bf16.vlgmr.msra.gmra.mxu1 %vm279_vm0, %v254_v7 }
  0x99   : > { %v295_v10 = vpop.f32.mrf.mxu0  ;;  %v300_v11 = vpop.f32.mrf.mxu1 }
  0x9a   : > { %v296_v12 = vadd.f32 %v295_v10, %v244_v8  ;;  %v301_v13 = vadd.f32 %v300_v11, %v246_v9 }
  0x9c   : > { %305 = vst.msk [vmem:[%s230_s8] sm:$0xff] %vm304_vm1, %v296_v12 }
  0x9d   : > { %307 = vst.msk [vmem:[%s230_s8 + $0x10] sm:$0xff] %vm304_vm1, %v301_v13 }
  0xa1   : > { %v297_v15 = vpop.f32.mrf.mxu0  ;;  %v302_v16 = vpop.f32.mrf.mxu1 }
  0xa2   : > { %v298_v17 = vadd.f32 %v297_v15, %v245_v14 }
  0xa4   : > { %306 = vst.msk [vmem:[%s230_s8 + $0x8] sm:$0xff] %vm304_vm1, %v298_v17 }
  0xa5 PF: > { %s13_s14 = sadd.s32 1, %s499_s14   ;;  %s579_s12 = smov %s495_s13 }
  0xa6   : > { %p10_p5 = scmp.ge.s32.totalorder %s13_s14, 4   ;;  %s580_s13 = smov %s582_s15 }
  0xa8   :  { %12 = sbr.rel (!%p10_p5) target bundleno = 2 (0x2), region = 65 }

</bundles_post_ra>
